<compile_context>
chip_gen: v7x
topology: tpu7x:2x2x1
jax: 0.10.0
libtpu: 0.0.40
codegen_flags: <defaults>
</compile_context>

<pallas_src>
import functools

import jax
import jax.numpy as jnp
from jax.experimental import pallas as pl
from jax.experimental.pallas import tpu as pltpu


def _round_up(x, m):
    return (x + m - 1) // m * m


def _pick_row_tile(rows8):
    """Row-strip size: one step for tiny problems, >=4 steps for big ones."""
    if rows8 <= 1024:
        return rows8                      # single grid step, no per-step cost
    for tm in (1024, 512, 256):
        if rows8 // tm >= 4:              # enough steps for DMA/compute overlap
            return tm                     # (and >=2 steps per v7x TensorCore)
    return 128


def conv_gemm_kernel(p_ref, w_ref, b_ref, o_ref):
    """One row-strip of the im2col GEMM.

    p_ref: (TM, K)       im2col patches (compute dtype, e.g. bf16)
    w_ref: (K, OC_pad)   flattened (kh, kw, c) x oc weights, OC padded to 128
    b_ref: (1, OC_pad)   f32 bias
    o_ref: (TM, OC_pad)  lane-dense output strip
    """
    acc = jnp.dot(p_ref[...], w_ref[...], preferred_element_type=jnp.float32)
    # Epilogue stays in f32 (v5e VPU has no bf16 path); single cast at the end.
    o_ref[...] = (acc + b_ref[...]).astype(o_ref.dtype)


@functools.partial(jax.jit, static_argnames=("pad", "compute_dtype"))
def conv_layer_forward(x_nchw, w_oihw, bias, pad=1, compute_dtype=jnp.float32):
    """ConvLayer.forward: SAME-padded, stride-1, dilation-1 Conv2d (NCHW)."""
    B, C, H, W = x_nchw.shape
    OC, _, KH, KW = w_oihw.shape
    out_dtype = x_nchw.dtype

    # ---- glue (XLA): layout, SAME padding, im2col, OC / row padding ----
    x_nhwc = jnp.transpose(x_nchw, (0, 2, 3, 1))
    x_pad = jnp.pad(x_nhwc, ((0, 0), (pad, pad), (pad, pad), (0, 0)))
    # im2col slab: taps ordered (kh, kw, c) along the last axis.
    taps = [x_pad[:, kh:kh + H, kw:kw + W, :]
            for kh in range(KH) for kw in range(KW)]
    K = KH * KW * C
    rows = B * H * W
    patches = jnp.concatenate(taps, axis=-1).astype(compute_dtype)
    patches = patches.reshape(rows, K)

    tm = _pick_row_tile(_round_up(rows, 8))
    rows_pad = _round_up(rows, tm)
    if rows_pad != rows:
        patches = jnp.pad(patches, ((0, rows_pad - rows), (0, 0)))

    OC_pad = _round_up(OC, 128)           # lane-dense output / accumulator
    w_flat = jnp.transpose(w_oihw, (2, 3, 1, 0)).reshape(K, OC)   # (kh,kw,c,oc)
    w_flat = jnp.pad(w_flat, ((0, 0), (0, OC_pad - OC))).astype(compute_dtype)
    b_pad = jnp.pad(bias.astype(jnp.float32),
                    (0, OC_pad - OC)).reshape(1, OC_pad)

    grid = (rows_pad // tm,)
    in_itemsize = jnp.dtype(compute_dtype).itemsize
    cost = pl.CostEstimate(
        flops=2 * rows_pad * K * OC_pad,
        transcendentals=0,
        bytes_accessed=(rows_pad * K * in_itemsize
                        + K * OC_pad * in_itemsize
                        + OC_pad * 4
                        + rows_pad * OC_pad * jnp.dtype(out_dtype).itemsize),
    )

    out = pl.pallas_call(
        conv_gemm_kernel,
        out_shape=jax.ShapeDtypeStruct((rows_pad, OC_pad), out_dtype),
        grid_spec=pltpu.PrefetchScalarGridSpec(
            num_scalar_prefetch=0,
            grid=grid,
            in_specs=[
                pl.BlockSpec((tm, K), lambda i: (i, 0)),
                pl.BlockSpec((K, OC_pad), lambda i: (0, 0)),
                pl.BlockSpec((1, OC_pad), lambda i: (0, 0)),
            ],
            out_specs=pl.BlockSpec((tm, OC_pad), lambda i: (i, 0)),
        ),
        compiler_params=pltpu.CompilerParams(
            dimension_semantics=("parallel",)),
        cost_estimate=cost,
    )(patches, w_flat, b_pad)

    out = out[:rows, :OC].reshape(B, H, W, OC)
    return jnp.transpose(out, (0, 3, 1, 2))          # back to NCHW


def kaiming_normal_oihw(key, out_ch, in_ch, kh, kw):
    """nn.init.kaiming_normal_ defaults: fan_in mode, leaky_relu gain=sqrt(2)."""
    fan_in = in_ch * kh * kw
    std = (2.0 / fan_in) ** 0.5
    return std * jax.random.normal(key, (out_ch, in_ch, kh, kw), jnp.float32)


if __name__ == "__main__":
    # ConvLayer(in_channels=4, out_channels=8) with defaults.
    B, C_in, C_out, H, W, KS, PAD = 2, 4, 8, 16, 16, 3, 1

    key = jax.random.PRNGKey(0)
    kx, kw = jax.random.split(key)
    x = jax.random.normal(kx, (B, C_in, H, W), jnp.float32)      # NCHW input
    weight = kaiming_normal_oihw(kw, C_out, C_in, KS, KS)        # OIHW
    bias = jnp.zeros((C_out,), jnp.float32)                      # const 0.0

    # Reference (PyTorch Conv2d = cross-correlation, no kernel flip).
    ref = jax.lax.conv_general_dilated(
        x, weight, window_strides=(1, 1), padding=((PAD, PAD), (PAD, PAD)),
        dimension_numbers=("NCHW", "OIHW", "NCHW"),
    ) + bias[None, :, None, None]

    # f32 operand path: exact semantics of the PyTorch module.
    out_f32 = jax.block_until_ready(
        conv_layer_forward(x, weight, bias, pad=PAD,
                           compute_dtype=jnp.float32))
    assert out_f32.shape == (B, C_out, H, W)
    assert jnp.allclose(out_f32, ref, atol=1e-4, rtol=1e-4)

    # bf16 operand / f32 accumulate path: v6e & v7x MXU fast path
    # (intentional precision tradeoff -> looser tolerance).
    out_bf16 = jax.block_until_ready(
        conv_layer_forward(x, weight, bias, pad=PAD,
                           compute_dtype=jnp.bfloat16))
    assert out_bf16.shape == (B, C_out, H, W)
    assert jnp.allclose(out_bf16, ref, atol=5e-2, rtol=5e-2)

    print("KERNEL_OK")
</pallas_src>

<mosaic_0001>
module attributes {stable_mosaic.version = 11 : i64} {
  func.func @conv_gemm_kernel(%arg0: i32, %arg1: memref<512x36xf32, #tpu.memory_space<vmem>>, %arg2: memref<36x128xf32, #tpu.memory_space<vmem>>, %arg3: memref<1x128xf32, #tpu.memory_space<vmem>>, %arg4: memref<512x128xf32, #tpu.memory_space<vmem>>) attributes {dimension_semantics = [#tpu.dimension_semantics<parallel>], iteration_bounds = array<i64: 1>, scalar_prefetch = 0 : i64, scratch_operands = 0 : i64, tpu.core_type = #tpu.core_type<tc>, window_params = [{transform_indices = @transform_0, window_bounds = array<i64: 512, 36>}, {pipeline_mode = #tpu.pipeline_mode<synchronous>, transform_indices = @transform_1, window_bounds = array<i64: 36, 128>}, {pipeline_mode = #tpu.pipeline_mode<synchronous>, transform_indices = @transform_2, window_bounds = array<i64: 1, 128>}, {transform_indices = @transform_3, window_bounds = array<i64: 512, 128>}]} {
    %c0 = arith.constant 0 : index
    %c0_0 = arith.constant 0 : index
    %0 = vector.load %arg1[%c0, %c0_0] : memref<512x36xf32, #tpu.memory_space<vmem>>, vector<512x36xf32>
    %c0_1 = arith.constant 0 : index
    %c0_2 = arith.constant 0 : index
    %1 = vector.load %arg2[%c0_1, %c0_2] : memref<36x128xf32, #tpu.memory_space<vmem>>, vector<36x128xf32>
    %cst = arith.constant dense<0.000000e+00> : vector<512x128xf32>
    %2 = tpu.matmul %0, %1, %cst {dimension_numbers = #tpu.dot_dimension_numbers<[1], [0], [0], [1], [0, 0, 1, 1], [], []>} : vector<512x36xf32>, vector<36x128xf32>, vector<512x128xf32> -> vector<512x128xf32>
    %c0_3 = arith.constant 0 : index
    %c0_4 = arith.constant 0 : index
    %3 = vector.load %arg3[%c0_3, %c0_4] : memref<1x128xf32, #tpu.memory_space<vmem>>, vector<1x128xf32>
    %4 = vector.broadcast %3 : vector<1x128xf32> to vector<512x128xf32>
    %5 = arith.addf %2, %4 : vector<512x128xf32>
    %c0_5 = arith.constant 0 : index
    %c0_6 = arith.constant 0 : index
    %6 = vector.load %arg4[%c0_5, %c0_6] : memref<512x128xf32, #tpu.memory_space<vmem>>, vector<512x128xf32>
    tpu.vector_store %arg4[%c0_5, %c0_6], %5 {strides = array<i32>} : memref<512x128xf32, #tpu.memory_space<vmem>>, vector<512x128xf32>,
    return
  }
  func.func @transform_0(%arg0: i32) -> (i32, i32) {
    %c0_i32 = arith.constant 0 : i32
    %c0_i32_0 = arith.constant 0 : i32
    return %arg0, %c0_i32 : i32, i32
  }
  func.func @transform_1(%arg0: i32) -> (i32, i32) {
    %c0_i32 = arith.constant 0 : i32
    %c0_i32_0 = arith.constant 0 : i32
    %c0_i32_1 = arith.constant 0 : i32
    return %c0_i32, %c0_i32_0 : i32, i32
  }
  func.func @transform_2(%arg0: i32) -> (i32, i32) {
    %c0_i32 = arith.constant 0 : i32
    %c0_i32_0 = arith.constant 0 : i32
    %c0_i32_1 = arith.constant 0 : i32
    return %c0_i32, %c0_i32_0 : i32, i32
  }
  func.func @transform_3(%arg0: i32) -> (i32, i32) {
    %c0_i32 = arith.constant 0 : i32
    %c0_i32_0 = arith.constant 0 : i32
    return %arg0, %c0_i32 : i32, i32
  }
}

</mosaic_0001>

<bundles_post_ra>
// kernel: conv_layer_forward.1
= control target key start
LH: loop header
LB: loop body
LE: loop exit
PB: predicated region body
PF: predicated region fallthrough
CT: control target
= control target key end

     0   :  { %vm90_vm0 = vcmask 293888   ;;  %vm283_vm1 = vcmask 1043456   ;;  %s1547_s1 = inlined_call_operand.vmem [shape: f32[36,128], index: 1, kind: input, shape index: {}]   ;;  %s1548_s0 = inlined_call_operand.vmem [shape: f32[512,36], index: 0, kind: input, shape index: {}]   ;;  %s1549_s2 = inlined_call_operand.vmem [shape: f32[1,128], index: 2, kind: input, shape index: {}]   ;;  %s1550_s3 = inlined_call_operand.vmem [shape: f32[512,128], index: 3, kind: output, shape index: {}]  }
   0x1   :  { %v78_v0 = vld [vmem:[%s1547_s1] sm:$0xff]  ;;  %v79_v1 = vld [vmem:[%s1547_s1 + $0x8] sm:$0xff]  ;;  %v80_v2 = vld [vmem:[%s1547_s1 + $0x10] sm:$0xff] }
   0x2   :  { %v981_v3 = vpack.c.bf16 %v79_v1, %v78_v0  ;;  %v81_v4 = vld [vmem:[%s1547_s1 + $0x18] sm:$0xff]  ;;  %v14_v5 = vld [vmem:[%s1548_s0] sm:$0xff]  ;;  %v15_v9 = vld [vmem:[%s1548_s0 + $0x8] sm:$0xff] }
   0x3   :  { %v985_v6 = vpack.c.bf16 %v81_v4, %v80_v2  ;;  %885 = vmatprep.mubr.msk.f32.mxu0 %vm90_vm0, %v14_v5  ;;  %v46_v7 = vld [vmem:[%s1548_s0 + $0x100] sm:$0xff]  ;;  %v47_v10 = vld [vmem:[%s1548_s0 + $0x108] sm:$0xff]  ;;  %v16_v11 = vld [vmem:[%s1548_s0 + $0x10] sm:$0xff] }
   0x4   :  { %982 = vmatprep.subr.bf16.mxu0 %v981_v3  ;;  %989 = vmatprep.subr.bf16.mxu1 %v981_v3  ;;  %v82_v8 = vld [vmem:[%s1547_s1 + $0x20] sm:$0xf]  ;;  %v48_v12 = vld [vmem:[%s1548_s0 + $0x110] sm:$0xff]  ;;  %v17_v13 = vld [vmem:[%s1548_s0 + $0x18] sm:$0xff] }
   0x5   :  { %984 = vmatpush3.bf16.msra.mxu0 %v981_v3  ;;  %992 = vmatpush3.bf16.msra.mxu1 %v981_v3  ;;  %v49_v14 = vld [vmem:[%s1548_s0 + $0x118] sm:$0xff]  ;;  %v18_v15 = vld [vmem:[%s1548_s0 + $0x20] sm:$0xff]  ;;  %v19_v17 = vld [vmem:[%s1548_s0 + $0x28] sm:$0xff] }
   0x6   :  { %986 = vmatprep.subr.bf16.mxu0 %v985_v6  ;;  %990 = vmatprep.subr.bf16.mxu1 %v985_v6  ;;  %v50_v16 = vld [vmem:[%s1548_s0 + $0x120] sm:$0xff]  ;;  %v51_v18 = vld [vmem:[%s1548_s0 + $0x128] sm:$0xff]  ;;  %v20_v19 = vld [vmem:[%s1548_s0 + $0x30] sm:$0xff] }
   0x7   :  { %933 = vmatprep.mubr.msk.f32.mxu1 %vm90_vm0, %v46_v7  ;;  %v52_v20 = vld [vmem:[%s1548_s0 + $0x130] sm:$0xff]  ;;  %v21_v21 = vld [vmem:[%s1548_s0 + $0x38] sm:$0xff]  ;;  %v22_v23 = vld [vmem:[%s1548_s0 + $0x40] sm:$0xff] }
   0x8   :  { %v53_v22 = vld [vmem:[%s1548_s0 + $0x138] sm:$0xff]  ;;  %v54_v24 = vld [vmem:[%s1548_s0 + $0x140] sm:$0xff]  ;;  %v23_v25 = vld [vmem:[%s1548_s0 + $0x48] sm:$0xff] }
   0x9   :  { %988 = vmatpush3.bf16.msra.mxu0 %v985_v6  ;;  %993 = vmatpush3.bf16.msra.mxu1 %v985_v6  ;;  %v55_v26 = vld [vmem:[%s1548_s0 + $0x148] sm:$0xff]  ;;  %v24_v27 = vld [vmem:[%s1548_s0 + $0x50] sm:$0xff]  ;;  %v25_v29 = vld [vmem:[%s1548_s0 + $0x58] sm:$0xff] }
   0xa   :  { %883 = vmatprep.subr.msk.mxu0 %vm283_vm1, %v82_v8  ;;  %991 = vmatprep.subr.msk.mxu1 %vm283_vm1, %v82_v8  ;;  %v56_v28 = vld [vmem:[%s1548_s0 + $0x150] sm:$0xff]  ;;  %v57_v30 = vld [vmem:[%s1548_s0 + $0x158] sm:$0xff]  ;;  %v26_v31 = vld [vmem:[%s1548_s0 + $0x60] sm:$0xff] }
   0xb   :  { %v58_v32 = vld [vmem:[%s1548_s0 + $0x160] sm:$0xff]  ;;  %v27_v33 = vld [vmem:[%s1548_s0 + $0x68] sm:$0xff]  ;;  %v28_v35 = vld [vmem:[%s1548_s0 + $0x70] sm:$0xff] }
   0xc   :  { %v59_v34 = vld [vmem:[%s1548_s0 + $0x168] sm:$0xff]  ;;  %v60_v36 = vld [vmem:[%s1548_s0 + $0x170] sm:$0xff]  ;;  %v29_v37 = vld [vmem:[%s1548_s0 + $0x78] sm:$0xff] }
   0xd   :  { %884 = vmatpush3.msk.msra.mxu0 %vm283_vm1, %v82_v8  ;;  %994 = vmatpush3.msk.msra.mxu1 %vm283_vm1, %v82_v8  ;;  %v61_v38 = vld [vmem:[%s1548_s0 + $0x178] sm:$0xff]  ;;  %v30_v39 = vld [vmem:[%s1548_s0 + $0x80] sm:$0xff]  ;;  %v31_v41 = vld [vmem:[%s1548_s0 + $0x88] sm:$0xff] }
   0xe   :  { %886 = vmatmul.mubr.msk.f32.vlgmr.msra.gmra.mrb[0].mxu0 %vm90_vm0, %v15_v9  ;;  %934 = vmatmul.mubr.msk.f32.vlgmr.msra.gmra.mrb[0].mxu1 %vm90_vm0, %v47_v10  ;;  %v62_v40 = vld [vmem:[%s1548_s0 + $0x180] sm:$0xff]  ;;  %v63_v42 = vld [vmem:[%s1548_s0 + $0x188] sm:$0xff]  ;;  %v32_v43 = vld [vmem:[%s1548_s0 + $0x90] sm:$0xff] }
   0xf   :  { %888 = vmatprep.mubr.msk.f32.mxu0 %vm90_vm0, %v16_v11  ;;  %936 = vmatprep.mubr.msk.f32.mxu1 %vm90_vm0, %v48_v12  ;;  %v64_v44 = vld [vmem:[%s1548_s0 + $0x190] sm:$0xff]  ;;  %v33_v45 = vld [vmem:[%s1548_s0 + $0x98] sm:$0xff]  ;;  %v34_v47 = vld [vmem:[%s1548_s0 + $0xa0] sm:$0xff] }
  0x10   :  { %v65_v46 = vld [vmem:[%s1548_s0 + $0x198] sm:$0xff]  ;;  %v66_v48 = vld [vmem:[%s1548_s0 + $0x1a0] sm:$0xff]  ;;  %v35_v49 = vld [vmem:[%s1548_s0 + $0xa8] sm:$0xff] }
  0x11   :  { %v67_v50 = vld [vmem:[%s1548_s0 + $0x1a8] sm:$0xff]  ;;  %v36_v51 = vld [vmem:[%s1548_s0 + $0xb0] sm:$0xff]  ;;  %v37_v53 = vld [vmem:[%s1548_s0 + $0xb8] sm:$0xff] }
  0x12   :  { %889 = vmatmul.mubr.msk.f32.gmra.mrb[2].mxu0 %vm90_vm0, %v17_v13  ;;  %937 = vmatmul.mubr.msk.f32.gmra.mrb[2].mxu1 %vm90_vm0, %v49_v14  ;;  %v68_v52 = vld [vmem:[%s1548_s0 + $0x1b0] sm:$0xff]  ;;  %v69_v54 = vld [vmem:[%s1548_s0 + $0x1b8] sm:$0xff]  ;;  %v38_v55 = vld [vmem:[%s1548_s0 + $0xc0] sm:$0xff] }
  0x13   :  { %891 = vmatprep.mubr.msk.f32.mxu0 %vm90_vm0, %v18_v15  ;;  %939 = vmatprep.mubr.msk.f32.mxu1 %vm90_vm0, %v50_v16  ;;  %v70_v56 = vld [vmem:[%s1548_s0 + $0x1c0] sm:$0xff]  ;;  %v39_v57 = vld [vmem:[%s1548_s0 + $0xc8] sm:$0xff]  ;;  %v40_v59 = vld [vmem:[%s1548_s0 + $0xd0] sm:$0xff] }
  0x14   :  { %v71_v58 = vld [vmem:[%s1548_s0 + $0x1c8] sm:$0xff]  ;;  %v72_v60 = vld [vmem:[%s1548_s0 + $0x1d0] sm:$0xff]  ;;  %v41_v61 = vld [vmem:[%s1548_s0 + $0xd8] sm:$0xff] }
  0x15   :  { %v73_v62 = vld [vmem:[%s1548_s0 + $0x1d8] sm:$0xff]  ;;  %v42_v63 = vld [vmem:[%s1548_s0 + $0xe0] sm:$0xff]  ;;  %v43_v1 = vld [vmem:[%s1548_s0 + $0xe8] sm:$0xff] }
  0x16   :  { %892 = vmatmul.mubr.msk.f32.gmra.mrb[4].mxu0 %vm90_vm0, %v19_v17  ;;  %940 = vmatmul.mubr.msk.f32.gmra.mrb[4].mxu1 %vm90_vm0, %v51_v18  ;;  %v74_v0 = vld [vmem:[%s1548_s0 + $0x1e0] sm:$0xff]  ;;  %v75_v2 = vld [vmem:[%s1548_s0 + $0x1e8] sm:$0xff]  ;;  %v44_v3 = vld [vmem:[%s1548_s0 + $0xf0] sm:$0xff] }
  0x17   :  { %894 = vmatprep.mubr.msk.f32.mxu0 %vm90_vm0, %v20_v19  ;;  %942 = vmatprep.mubr.msk.f32.mxu1 %vm90_vm0, %v52_v20  ;;  %v76_v4 = vld [vmem:[%s1548_s0 + $0x1f0] sm:$0xff]  ;;  %v45_v5 = vld [vmem:[%s1548_s0 + $0xf8] sm:$0xff]  ;;  %v1289_v7 = vld [vmem:[%s1549_s2] ss:$0 sm:$0xff] }
  0x18   :  { %v77_v6 = vld [vmem:[%s1548_s0 + $0x1f8] sm:$0xff] }
  0x1a   :  { %895 = vmatmul.mubr.msk.f32.gmra.mrb[6].mxu0 %vm90_vm0, %v21_v21  ;;  %943 = vmatmul.mubr.msk.f32.gmra.mrb[6].mxu1 %vm90_vm0, %v53_v22 }
  0x1b   :  { %897 = vmatprep.mubr.msk.f32.mxu0 %vm90_vm0, %v22_v23  ;;  %945 = vmatprep.mubr.msk.f32.mxu1 %vm90_vm0, %v54_v24 }
  0x1e   :  { %898 = vmatmul.mubr.msk.f32.gmra.mrb[8].mxu0 %vm90_vm0, %v23_v25  ;;  %946 = vmatmul.mubr.msk.f32.gmra.mrb[8].mxu1 %vm90_vm0, %v55_v26 }
  0x1f   :  { %900 = vmatprep.mubr.msk.f32.mxu0 %vm90_vm0, %v24_v27  ;;  %948 = vmatprep.mubr.msk.f32.mxu1 %vm90_vm0, %v56_v28 }
  0x22   :  { %901 = vmatmul.mubr.msk.f32.gmra.mrb[10].mxu0 %vm90_vm0, %v25_v29  ;;  %949 = vmatmul.mubr.msk.f32.gmra.mrb[10].mxu1 %vm90_vm0, %v57_v30 }
  0x23   :  { %903 = vmatprep.mubr.msk.f32.mxu0 %vm90_vm0, %v26_v31  ;;  %951 = vmatprep.mubr.msk.f32.mxu1 %vm90_vm0, %v58_v32 }
  0x26   :  { %904 = vmatmul.mubr.msk.f32.gmra.mrb[12].mxu0 %vm90_vm0, %v27_v33  ;;  %952 = vmatmul.mubr.msk.f32.gmra.mrb[12].mxu1 %vm90_vm0, %v59_v34 }
  0x27   :  { %906 = vmatprep.mubr.msk.f32.mxu0 %vm90_vm0, %v28_v35  ;;  %954 = vmatprep.mubr.msk.f32.mxu1 %vm90_vm0, %v60_v36 }
  0x2a   :  { %907 = vmatmul.mubr.msk.f32.gmra.mrb[14].mxu0 %vm90_vm0, %v29_v37  ;;  %955 = vmatmul.mubr.msk.f32.gmra.mrb[14].mxu1 %vm90_vm0, %v61_v38 }
  0x2b   :  { %909 = vmatprep.mubr.msk.f32.mxu0 %vm90_vm0, %v30_v39  ;;  %957 = vmatprep.mubr.msk.f32.mxu1 %vm90_vm0, %v62_v40 }
  0x2e   :  { %910 = vmatmul.mubr.msk.f32.gmra.mrb[16].mxu0 %vm90_vm0, %v31_v41  ;;  %958 = vmatmul.mubr.msk.f32.gmra.mrb[16].mxu1 %vm90_vm0, %v63_v42 }
  0x2f   :  { %912 = vmatprep.mubr.msk.f32.mxu0 %vm90_vm0, %v32_v43  ;;  %960 = vmatprep.mubr.msk.f32.mxu1 %vm90_vm0, %v64_v44 }
  0x32   :  { %913 = vmatmul.mubr.msk.f32.gmra.mrb[18].mxu0 %vm90_vm0, %v33_v45  ;;  %961 = vmatmul.mubr.msk.f32.gmra.mrb[18].mxu1 %vm90_vm0, %v65_v46 }
  0x33   :  { %915 = vmatprep.mubr.msk.f32.mxu0 %vm90_vm0, %v34_v47  ;;  %963 = vmatprep.mubr.msk.f32.mxu1 %vm90_vm0, %v66_v48 }
  0x36   :  { %916 = vmatmul.mubr.msk.f32.gmra.mrb[20].mxu0 %vm90_vm0, %v35_v49  ;;  %964 = vmatmul.mubr.msk.f32.gmra.mrb[20].mxu1 %vm90_vm0, %v67_v50 }
  0x37   :  { %918 = vmatprep.mubr.msk.f32.mxu0 %vm90_vm0, %v36_v51  ;;  %966 = vmatprep.mubr.msk.f32.mxu1 %vm90_vm0, %v68_v52 }
  0x3a   :  { %919 = vmatmul.mubr.msk.f32.gmra.mrb[22].mxu0 %vm90_vm0, %v37_v53  ;;  %967 = vmatmul.mubr.msk.f32.gmra.mrb[22].mxu1 %vm90_vm0, %v69_v54 }
  0x3b   :  { %921 = vmatprep.mubr.msk.f32.mxu0 %vm90_vm0, %v38_v55  ;;  %969 = vmatprep.mubr.msk.f32.mxu1 %vm90_vm0, %v70_v56 }
  0x3e   :  { %922 = vmatmul.mubr.msk.f32.gmra.mrb[24].mxu0 %vm90_vm0, %v39_v57  ;;  %970 = vmatmul.mubr.msk.f32.gmra.mrb[24].mxu1 %vm90_vm0, %v71_v58 }
  0x3f   :  { %924 = vmatprep.mubr.msk.f32.mxu0 %vm90_vm0, %v40_v59  ;;  %972 = vmatprep.mubr.msk.f32.mxu1 %vm90_vm0, %v72_v60 }
  0x42   :  { %925 = vmatmul.mubr.msk.f32.gmra.mrb[26].mxu0 %vm90_vm0, %v41_v61  ;;  %973 = vmatmul.mubr.msk.f32.gmra.mrb[26].mxu1 %vm90_vm0, %v73_v62 }
  0x43   :  { %927 = vmatprep.mubr.msk.f32.mxu0 %vm90_vm0, %v42_v63  ;;  %975 = vmatprep.mubr.msk.f32.mxu1 %vm90_vm0, %v74_v0 }
  0x46   :  { %928 = vmatmul.mubr.msk.f32.gmra.mrb[28].mxu0 %vm90_vm0, %v43_v1  ;;  %976 = vmatmul.mubr.msk.f32.gmra.mrb[28].mxu1 %vm90_vm0, %v75_v2 }
  0x47   :  { %930 = vmatprep.mubr.msk.f32.mxu0 %vm90_vm0, %v44_v3  ;;  %978 = vmatprep.mubr.msk.f32.mxu1 %vm90_vm0, %v76_v4 }
  0x4a   :  { %931 = vmatmul.mubr.msk.f32.gmra.mrb[30].mxu0 %vm90_vm0, %v45_v5  ;;  %979 = vmatmul.mubr.msk.f32.gmra.mrb[30].mxu1 %vm90_vm0, %v77_v6 }
  0xe1   :  { %v887_v8 = vpop.f32.mrb[0].mxu0  ;;  %v935_v9 = vpop.f32.mrb[0].mxu1 }
  0xe2   :  { %v359_v10 = vadd.f32 %v887_v8, %v1289_v7  ;;  %v519_v11 = vadd.f32 %v935_v9, %v1289_v7  ;;  %v353_v12 = vpop.f32.mrb[1].mxu0  ;;  %v513_v13 = vpop.f32.mrb[1].mxu1 }
  0xe3   :  { %v354_v14 = vadd.f32 %v1289_v7, %v353_v12  ;;  %v514_v15 = vadd.f32 %v1289_v7, %v513_v13 }
  0xe4   :  { %673 = vst [vmem:[%s1550_s3 + $0x8] sm:$0xff] %v359_v10  ;;  %705 = vst [vmem:[%s1550_s3 + $0x108] sm:$0xff] %v519_v11 }
  0xe5   :  { %672 = vst [vmem:[%s1550_s3] sm:$0xff] %v354_v14  ;;  %704 = vst [vmem:[%s1550_s3 + $0x100] sm:$0xff] %v514_v15  ;;  %v890_v16 = vpop.f32.mrb[2].mxu0  ;;  %v938_v17 = vpop.f32.mrb[2].mxu1 }
  0xe6   :  { %v369_v18 = vadd.f32 %v890_v16, %v1289_v7  ;;  %v529_v19 = vadd.f32 %v938_v17, %v1289_v7  ;;  %v363_v20 = vpop.f32.mrb[3].mxu0  ;;  %v523_v21 = vpop.f32.mrb[3].mxu1 }
  0xe7   :  { %v364_v22 = vadd.f32 %v1289_v7, %v363_v20  ;;  %v524_v23 = vadd.f32 %v1289_v7, %v523_v21 }
  0xe8   :  { %675 = vst [vmem:[%s1550_s3 + $0x18] sm:$0xff] %v369_v18  ;;  %707 = vst [vmem:[%s1550_s3 + $0x118] sm:$0xff] %v529_v19 }
  0xe9   :  { %674 = vst [vmem:[%s1550_s3 + $0x10] sm:$0xff] %v364_v22  ;;  %706 = vst [vmem:[%s1550_s3 + $0x110] sm:$0xff] %v524_v23  ;;  %v893_v24 = vpop.f32.mrb[4].mxu0  ;;  %v941_v25 = vpop.f32.mrb[4].mxu1 }
  0xea   :  { %v379_v26 = vadd.f32 %v893_v24, %v1289_v7  ;;  %v539_v27 = vadd.f32 %v941_v25, %v1289_v7  ;;  %v373_v28 = vpop.f32.mrb[5].mxu0  ;;  %v533_v29 = vpop.f32.mrb[5].mxu1 }
  0xeb   :  { %v374_v30 = vadd.f32 %v1289_v7, %v373_v28  ;;  %v534_v31 = vadd.f32 %v1289_v7, %v533_v29 }
  0xec   :  { %677 = vst [vmem:[%s1550_s3 + $0x28] sm:$0xff] %v379_v26  ;;  %709 = vst [vmem:[%s1550_s3 + $0x128] sm:$0xff] %v539_v27 }
  0xed   :  { %676 = vst [vmem:[%s1550_s3 + $0x20] sm:$0xff] %v374_v30  ;;  %708 = vst [vmem:[%s1550_s3 + $0x120] sm:$0xff] %v534_v31  ;;  %v896_v32 = vpop.f32.mrb[6].mxu0  ;;  %v944_v33 = vpop.f32.mrb[6].mxu1 }
  0xee   :  { %v389_v34 = vadd.f32 %v896_v32, %v1289_v7  ;;  %v549_v35 = vadd.f32 %v944_v33, %v1289_v7  ;;  %v383_v36 = vpop.f32.mrb[7].mxu0  ;;  %v543_v37 = vpop.f32.mrb[7].mxu1 }
  0xef   :  { %v384_v38 = vadd.f32 %v1289_v7, %v383_v36  ;;  %v544_v39 = vadd.f32 %v1289_v7, %v543_v37 }
  0xf0   :  { %679 = vst [vmem:[%s1550_s3 + $0x38] sm:$0xff] %v389_v34  ;;  %711 = vst [vmem:[%s1550_s3 + $0x138] sm:$0xff] %v549_v35 }
  0xf1   :  { %678 = vst [vmem:[%s1550_s3 + $0x30] sm:$0xff] %v384_v38  ;;  %710 = vst [vmem:[%s1550_s3 + $0x130] sm:$0xff] %v544_v39  ;;  %v899_v40 = vpop.f32.mrb[8].mxu0  ;;  %v947_v41 = vpop.f32.mrb[8].mxu1 }
  0xf2   :  { %v399_v42 = vadd.f32 %v899_v40, %v1289_v7  ;;  %v559_v43 = vadd.f32 %v947_v41, %v1289_v7  ;;  %v393_v44 = vpop.f32.mrb[9].mxu0  ;;  %v553_v45 = vpop.f32.mrb[9].mxu1 }
  0xf3   :  { %v394_v46 = vadd.f32 %v1289_v7, %v393_v44  ;;  %v554_v47 = vadd.f32 %v1289_v7, %v553_v45 }
  0xf4   :  { %681 = vst [vmem:[%s1550_s3 + $0x48] sm:$0xff] %v399_v42  ;;  %713 = vst [vmem:[%s1550_s3 + $0x148] sm:$0xff] %v559_v43 }
  0xf5   :  { %680 = vst [vmem:[%s1550_s3 + $0x40] sm:$0xff] %v394_v46  ;;  %712 = vst [vmem:[%s1550_s3 + $0x140] sm:$0xff] %v554_v47  ;;  %v902_v48 = vpop.f32.mrb[10].mxu0  ;;  %v950_v49 = vpop.f32.mrb[10].mxu1 }
  0xf6   :  { %v409_v50 = vadd.f32 %v902_v48, %v1289_v7  ;;  %v569_v51 = vadd.f32 %v950_v49, %v1289_v7  ;;  %v403_v52 = vpop.f32.mrb[11].mxu0  ;;  %v563_v53 = vpop.f32.mrb[11].mxu1 }
  0xf7   :  { %v404_v54 = vadd.f32 %v1289_v7, %v403_v52  ;;  %v564_v55 = vadd.f32 %v1289_v7, %v563_v53 }
  0xf8   :  { %683 = vst [vmem:[%s1550_s3 + $0x58] sm:$0xff] %v409_v50  ;;  %715 = vst [vmem:[%s1550_s3 + $0x158] sm:$0xff] %v569_v51 }
  0xf9   :  { %682 = vst [vmem:[%s1550_s3 + $0x50] sm:$0xff] %v404_v54  ;;  %714 = vst [vmem:[%s1550_s3 + $0x150] sm:$0xff] %v564_v55  ;;  %v905_v56 = vpop.f32.mrb[12].mxu0  ;;  %v953_v57 = vpop.f32.mrb[12].mxu1 }
  0xfa   :  { %v419_v58 = vadd.f32 %v905_v56, %v1289_v7  ;;  %v579_v59 = vadd.f32 %v953_v57, %v1289_v7  ;;  %v413_v60 = vpop.f32.mrb[13].mxu0  ;;  %v573_v61 = vpop.f32.mrb[13].mxu1 }
  0xfb   :  { %v414_v62 = vadd.f32 %v1289_v7, %v413_v60  ;;  %v574_v63 = vadd.f32 %v1289_v7, %v573_v61 }
  0xfc   :  { %685 = vst [vmem:[%s1550_s3 + $0x68] sm:$0xff] %v419_v58  ;;  %717 = vst [vmem:[%s1550_s3 + $0x168] sm:$0xff] %v579_v59 }
  0xfd   :  { %684 = vst [vmem:[%s1550_s3 + $0x60] sm:$0xff] %v414_v62  ;;  %716 = vst [vmem:[%s1550_s3 + $0x160] sm:$0xff] %v574_v63  ;;  %v908_v0 = vpop.f32.mrb[14].mxu0  ;;  %v956_v1 = vpop.f32.mrb[14].mxu1 }
  0xfe   :  { %v429_v2 = vadd.f32 %v908_v0, %v1289_v7  ;;  %v589_v3 = vadd.f32 %v956_v1, %v1289_v7  ;;  %v423_v4 = vpop.f32.mrb[15].mxu0  ;;  %v583_v5 = vpop.f32.mrb[15].mxu1 }
  0xff   :  { %v424_v6 = vadd.f32 %v1289_v7, %v423_v4  ;;  %v584_v8 = vadd.f32 %v1289_v7, %v583_v5 }
 0x100   :  { %687 = vst [vmem:[%s1550_s3 + $0x78] sm:$0xff] %v429_v2  ;;  %719 = vst [vmem:[%s1550_s3 + $0x178] sm:$0xff] %v589_v3 }
 0x101   :  { %686 = vst [vmem:[%s1550_s3 + $0x70] sm:$0xff] %v424_v6  ;;  %718 = vst [vmem:[%s1550_s3 + $0x170] sm:$0xff] %v584_v8  ;;  %v911_v9 = vpop.f32.mrb[16].mxu0  ;;  %v959_v10 = vpop.f32.mrb[16].mxu1 }
 0x102   :  { %v439_v11 = vadd.f32 %v911_v9, %v1289_v7  ;;  %v599_v12 = vadd.f32 %v959_v10, %v1289_v7  ;;  %v433_v13 = vpop.f32.mrb[17].mxu0  ;;  %v593_v14 = vpop.f32.mrb[17].mxu1 }
 0x103   :  { %v434_v15 = vadd.f32 %v1289_v7, %v433_v13  ;;  %v594_v16 = vadd.f32 %v1289_v7, %v593_v14 }
 0x104   :  { %689 = vst [vmem:[%s1550_s3 + $0x88] sm:$0xff] %v439_v11  ;;  %721 = vst [vmem:[%s1550_s3 + $0x188] sm:$0xff] %v599_v12 }
 0x105   :  { %688 = vst [vmem:[%s1550_s3 + $0x80] sm:$0xff] %v434_v15  ;;  %720 = vst [vmem:[%s1550_s3 + $0x180] sm:$0xff] %v594_v16  ;;  %v914_v17 = vpop.f32.mrb[18].mxu0  ;;  %v962_v18 = vpop.f32.mrb[18].mxu1 }
 0x106   :  { %v449_v19 = vadd.f32 %v914_v17, %v1289_v7  ;;  %v609_v20 = vadd.f32 %v962_v18, %v1289_v7  ;;  %v443_v21 = vpop.f32.mrb[19].mxu0  ;;  %v603_v22 = vpop.f32.mrb[19].mxu1 }
 0x107   :  { %v444_v23 = vadd.f32 %v1289_v7, %v443_v21  ;;  %v604_v24 = vadd.f32 %v1289_v7, %v603_v22 }
 0x108   :  { %691 = vst [vmem:[%s1550_s3 + $0x98] sm:$0xff] %v449_v19  ;;  %723 = vst [vmem:[%s1550_s3 + $0x198] sm:$0xff] %v609_v20 }
 0x109   :  { %690 = vst [vmem:[%s1550_s3 + $0x90] sm:$0xff] %v444_v23  ;;  %722 = vst [vmem:[%s1550_s3 + $0x190] sm:$0xff] %v604_v24  ;;  %v917_v25 = vpop.f32.mrb[20].mxu0  ;;  %v965_v26 = vpop.f32.mrb[20].mxu1 }
 0x10a   :  { %v459_v27 = vadd.f32 %v917_v25, %v1289_v7  ;;  %v619_v28 = vadd.f32 %v965_v26, %v1289_v7  ;;  %v453_v29 = vpop.f32.mrb[21].mxu0  ;;  %v613_v30 = vpop.f32.mrb[21].mxu1 }
 0x10b   :  { %v454_v31 = vadd.f32 %v1289_v7, %v453_v29  ;;  %v614_v32 = vadd.f32 %v1289_v7, %v613_v30 }
 0x10c   :  { %693 = vst [vmem:[%s1550_s3 + $0xa8] sm:$0xff] %v459_v27  ;;  %725 = vst [vmem:[%s1550_s3 + $0x1a8] sm:$0xff] %v619_v28 }
 0x10d   :  { %692 = vst [vmem:[%s1550_s3 + $0xa0] sm:$0xff] %v454_v31  ;;  %724 = vst [vmem:[%s1550_s3 + $0x1a0] sm:$0xff] %v614_v32  ;;  %v920_v33 = vpop.f32.mrb[22].mxu0  ;;  %v968_v34 = vpop.f32.mrb[22].mxu1 }
 0x10e   :  { %v469_v35 = vadd.f32 %v920_v33, %v1289_v7  ;;  %v629_v36 = vadd.f32 %v968_v34, %v1289_v7  ;;  %v463_v37 = vpop.f32.mrb[23].mxu0  ;;  %v623_v38 = vpop.f32.mrb[23].mxu1 }
 0x10f   :  { %v464_v39 = vadd.f32 %v1289_v7, %v463_v37  ;;  %v624_v40 = vadd.f32 %v1289_v7, %v623_v38 }
 0x110   :  { %695 = vst [vmem:[%s1550_s3 + $0xb8] sm:$0xff] %v469_v35  ;;  %727 = vst [vmem:[%s1550_s3 + $0x1b8] sm:$0xff] %v629_v36 }
 0x111   :  { %694 = vst [vmem:[%s1550_s3 + $0xb0] sm:$0xff] %v464_v39  ;;  %726 = vst [vmem:[%s1550_s3 + $0x1b0] sm:$0xff] %v624_v40  ;;  %v923_v41 = vpop.f32.mrb[24].mxu0  ;;  %v971_v42 = vpop.f32.mrb[24].mxu1 }
 0x112   :  { %v479_v43 = vadd.f32 %v923_v41, %v1289_v7  ;;  %v639_v44 = vadd.f32 %v971_v42, %v1289_v7  ;;  %v473_v45 = vpop.f32.mrb[25].mxu0  ;;  %v633_v46 = vpop.f32.mrb[25].mxu1 }
 0x113   :  { %v474_v47 = vadd.f32 %v1289_v7, %v473_v45  ;;  %v634_v48 = vadd.f32 %v1289_v7, %v633_v46 }
 0x114   :  { %697 = vst [vmem:[%s1550_s3 + $0xc8] sm:$0xff] %v479_v43  ;;  %729 = vst [vmem:[%s1550_s3 + $0x1c8] sm:$0xff] %v639_v44 }
 0x115   :  { %696 = vst [vmem:[%s1550_s3 + $0xc0] sm:$0xff] %v474_v47  ;;  %728 = vst [vmem:[%s1550_s3 + $0x1c0] sm:$0xff] %v634_v48  ;;  %v926_v49 = vpop.f32.mrb[26].mxu0  ;;  %v974_v50 = vpop.f32.mrb[26].mxu1 }
 0x116   :  { %v489_v51 = vadd.f32 %v926_v49, %v1289_v7  ;;  %v649_v52 = vadd.f32 %v974_v50, %v1289_v7  ;;  %v483_v53 = vpop.f32.mrb[27].mxu0  ;;  %v643_v54 = vpop.f32.mrb[27].mxu1 }
 0x117   :  { %v484_v55 = vadd.f32 %v1289_v7, %v483_v53  ;;  %v644_v56 = vadd.f32 %v1289_v7, %v643_v54 }
 0x118   :  { %699 = vst [vmem:[%s1550_s3 + $0xd8] sm:$0xff] %v489_v51  ;;  %731 = vst [vmem:[%s1550_s3 + $0x1d8] sm:$0xff] %v649_v52 }
 0x119   :  { %698 = vst [vmem:[%s1550_s3 + $0xd0] sm:$0xff] %v484_v55  ;;  %730 = vst [vmem:[%s1550_s3 + $0x1d0] sm:$0xff] %v644_v56  ;;  %v929_v57 = vpop.f32.mrb[28].mxu0  ;;  %v977_v58 = vpop.f32.mrb[28].mxu1 }
 0x11a   :  { %v499_v59 = vadd.f32 %v929_v57, %v1289_v7  ;;  %v659_v60 = vadd.f32 %v977_v58, %v1289_v7  ;;  %v493_v61 = vpop.f32.mrb[29].mxu0  ;;  %v653_v62 = vpop.f32.mrb[29].mxu1 }
 0x11b   :  { %v494_v63 = vadd.f32 %v1289_v7, %v493_v61  ;;  %v654_v0 = vadd.f32 %v1289_v7, %v653_v62 }
 0x11c   :  { %701 = vst [vmem:[%s1550_s3 + $0xe8] sm:$0xff] %v499_v59  ;;  %733 = vst [vmem:[%s1550_s3 + $0x1e8] sm:$0xff] %v659_v60 }
 0x11d   :  { %700 = vst [vmem:[%s1550_s3 + $0xe0] sm:$0xff] %v494_v63  ;;  %732 = vst [vmem:[%s1550_s3 + $0x1e0] sm:$0xff] %v654_v0  ;;  %v932_v1 = vpop.f32.mrb[30].mxu0  ;;  %v980_v2 = vpop.f32.mrb[30].mxu1 }
 0x11e   :  { %v509_v3 = vadd.f32 %v932_v1, %v1289_v7  ;;  %v669_v4 = vadd.f32 %v980_v2, %v1289_v7  ;;  %v503_v5 = vpop.f32.mrb[31].mxu0  ;;  %v663_v6 = vpop.f32.mrb[31].mxu1 }
 0x11f   :  { %v504_v8 = vadd.f32 %v1289_v7, %v503_v5  ;;  %v664_v9 = vadd.f32 %v1289_v7, %v663_v6 }
 0x120   :  { %703 = vst [vmem:[%s1550_s3 + $0xf8] sm:$0xff] %v509_v3  ;;  %735 = vst [vmem:[%s1550_s3 + $0x1f8] sm:$0xff] %v669_v4 }
 0x121   :  { %702 = vst [vmem:[%s1550_s3 + $0xf0] sm:$0xff] %v504_v8  ;;  %734 = vst [vmem:[%s1550_s3 + $0x1f0] sm:$0xff] %v664_v9 }

</bundles_post_ra>
